<compile_context>
chip_gen: v6e
topology: v6e:2x2x1
jax: 0.10.0
libtpu: 0.0.40
codegen_flags: <defaults>
</compile_context>

<pallas_src>
import functools

import jax
import jax.numpy as jnp
from jax.experimental import pallas as pl
from jax.experimental.pallas import tpu as pltpu


def _round_up(x, m):
    return ((x + m - 1) // m) * m


def _vmem_limit_bytes():
    # Generation-aware scoped-VMEM budget (~75% of per-core capacity).
    try:
        cap = getattr(pltpu.get_tpu_info(), "vmem_capacity_bytes",
                      64 * 1024 * 1024)
    except Exception:
        cap = 64 * 1024 * 1024
    return max(32 * 1024 * 1024, min(int(0.75 * cap), 100 * 1024 * 1024))


def _choose_n_tiling(num_codes):
    """Pick a lane-dense tile_n that divides the (128-aligned) vocab axis."""
    n_pad = _round_up(num_codes, 128)
    for t in (512, 256, 128):
        if n_pad % t == 0:
            return t, n_pad
    return 128, n_pad  # unreachable (n_pad is a multiple of 128)


def _choose_m_tiling(T, max_tile=512):
    """Prefer a tile_m that divides T exactly (no row padding / output slice)."""
    if T % 8 == 0:
        upper = min(max_tile, T)
        upper -= upper % 8
        for t in range(upper, 63, -8):
            if T % t == 0:
                return t, T
        if T <= max_tile:
            return T, T
    if T <= max_tile:
        t_pad = _round_up(T, 8)
        return t_pad, t_pad
    t_pad = _round_up(T, 256)
    return 256, t_pad


def _linear_kernel(x_ref, w_ref, b_ref, o_ref, *, tile_n, w_resident):
    # x_ref : (tile_m, D)              bf16  -- pre-gathered embeddings (M-tile)
    # w_ref : (N_pad, D) or (tile_n,D) bf16  -- resident full W or streamed N-tile
    # b_ref : (1, tile_n)              f32   -- bias N-tile
    # o_ref : (tile_m, tile_n)         out_dtype
    if w_resident:
        start = pl.multiple_of(pl.program_id(1) * tile_n, tile_n)
        w = w_ref[pl.ds(start, tile_n), :]          # (tile_n, D)
    else:
        w = w_ref[...]                               # (tile_n, D)
    # Contract on emb_dim of both operands (no materialized W^T), f32 acc.
    acc = jax.lax.dot_general(
        x_ref[...], w,
        dimension_numbers=(((1,), (1,)), ((), ())),
        preferred_element_type=jnp.float32,
    )                                                # (tile_m, tile_n) f32
    o_ref[...] = (acc + b_ref[...]).astype(o_ref.dtype)


def prepare_word2vec_params(emb_table, weight, bias):
    """Call-once parameter prep (hoisted out of the forward path).

    emb_table: (num_codes, emb_dim) f32; weight: (num_codes, emb_dim) f32
    (PyTorch nn.Linear layout); bias: (num_codes,) f32.
    """
    num_codes, emb_dim = emb_table.shape
    tile_n, n_pad = _choose_n_tiling(num_codes)

    emb_bf = emb_table.astype(jnp.bfloat16)                      # (V, D)
    w_bf = weight.astype(jnp.bfloat16)                           # (V, D)
    b_f32 = bias.astype(jnp.float32)
    if n_pad != num_codes:
        w_bf = jnp.pad(w_bf, ((0, n_pad - num_codes), (0, 0)))
        b_f32 = jnp.pad(b_f32, (0, n_pad - num_codes))
    b_f32 = b_f32.reshape(1, n_pad)

    return {
        "emb_bf": emb_bf, "w_bf": w_bf, "b_f32": b_f32,
        "num_codes": num_codes, "emb_dim": emb_dim,
        "tile_n": tile_n, "n_pad": n_pad,
    }


def word2vec_forward(x, params, *, out_dtype=jnp.bfloat16, tile_m_max=512):
    """x: int (B, L) token ids.  Returns (B, L, num_codes) logits."""
    emb_bf = params["emb_bf"]
    w_bf = params["w_bf"]
    b_f32 = params["b_f32"]
    num_codes = params["num_codes"]
    D = params["emb_dim"]
    tile_n = params["tile_n"]
    n_pad = params["n_pad"]

    B, L = x.shape
    T = B * L
    tile_m, t_pad = _choose_m_tiling(T, tile_m_max)

    idx = x.reshape(T).astype(jnp.int32)
    if t_pad != T:
        idx = jnp.pad(idx, (0, t_pad - T))

    # Embedding lookup as a direct XLA row gather (no one-hot matmul).
    embx = jnp.take(emb_bf, idx, axis=0)                         # (t_pad, D) bf16

    vmem_limit = _vmem_limit_bytes()
    out_bytes = jnp.dtype(out_dtype).itemsize
    tile_bytes = (2 * tile_m * D * 2                 # embx blocks (double-buffered)
                  + 2 * tile_m * tile_n * out_bytes  # out blocks
                  + 2 * tile_n * 4)                  # bias blocks
    # Keep the full W resident (constant index_map -> single DMA) when it fits.
    w_resident = (2 * n_pad * D * 2 + tile_bytes) <= int(0.7 * vmem_limit)

    if w_resident:
        w_spec = pl.BlockSpec((n_pad, D), lambda i, n: (0, 0))
    else:
        w_spec = pl.BlockSpec((tile_n, D), lambda i, n: (n, 0))

    kernel = functools.partial(_linear_kernel, tile_n=tile_n,
                               w_resident=w_resident)
    grid = (t_pad // tile_m, n_pad // tile_n)

    out = pl.pallas_call(
        kernel,
        out_shape=jax.ShapeDtypeStruct((t_pad, n_pad), out_dtype),
        grid_spec=pltpu.PrefetchScalarGridSpec(
            num_scalar_prefetch=0,
            grid=grid,
            in_specs=[
                pl.BlockSpec((tile_m, D), lambda i, n: (i, 0)),   # embx M-tile
                w_spec,                                           # W (resident or N-tile)
                pl.BlockSpec((1, tile_n), lambda i, n: (0, n)),   # bias N-tile
            ],
            out_specs=pl.BlockSpec((tile_m, tile_n), lambda i, n: (i, n)),
        ),
        compiler_params=pltpu.CompilerParams(
            dimension_semantics=("parallel", "parallel"),
            vmem_limit_bytes=vmem_limit,
        ),
    )(embx, w_bf, b_f32)

    if t_pad != T:
        out = out[:T]
    if n_pad != num_codes:
        out = out[:, :num_codes]
    return out.reshape(B, L, num_codes)


if __name__ == "__main__":
    # Small deterministic problem consistent with the module's forward.
    B, L = 2, 8
    emb_dim = 128
    num_codes = 256

    key = jax.random.PRNGKey(0)
    k_emb, k_w, k_b, k_x = jax.random.split(key, 4)

    emb_table = jax.random.normal(k_emb, (num_codes, emb_dim), dtype=jnp.float32)
    weight = jax.random.normal(k_w, (num_codes, emb_dim), dtype=jnp.float32) * 0.05
    bias = jax.random.normal(k_b, (num_codes,), dtype=jnp.float32) * 0.01
    x = jax.random.randint(k_x, (B, L), 0, num_codes, dtype=jnp.int32)

    params = prepare_word2vec_params(emb_table, weight, bias)   # hoisted prep
    fwd = jax.jit(lambda xx: word2vec_forward(xx, params))

    out = jax.block_until_ready(fwd(x))

    # Reference using the same bf16-quantized parameters the kernel feeds the
    # MXU, with f32 accumulation (apples-to-apples numerics).
    emb_q = emb_table.astype(jnp.bfloat16).astype(jnp.float32)
    w_q = weight.astype(jnp.bfloat16).astype(jnp.float32)
    ref = jnp.take(emb_q, x, axis=0) @ w_q.T + bias

    assert out.shape == (B, L, num_codes)
    err = float(jnp.max(jnp.abs(out.astype(jnp.float32) - ref)))
    assert err < 3e-2, err

    print("KERNEL_OK")
</pallas_src>

<mosaic_0001>
module attributes {stable_mosaic.version = 11 : i64} {
  func.func @_linear_kernel(%arg0: i32, %arg1: i32, %arg2: memref<16x128xbf16, #tpu.memory_space<vmem>>, %arg3: memref<256x128xbf16, #tpu.memory_space<vmem>>, %arg4: memref<1x256xf32, #tpu.memory_space<vmem>>, %arg5: memref<16x256xbf16, #tpu.memory_space<vmem>>) attributes {dimension_semantics = [#tpu.dimension_semantics<parallel>, #tpu.dimension_semantics<parallel>], iteration_bounds = array<i64: 1, 1>, scalar_prefetch = 0 : i64, scratch_operands = 0 : i64, tpu.core_type = #tpu.core_type<tc>, window_params = [{transform_indices = @transform_0, window_bounds = array<i64: 16, 128>}, {pipeline_mode = #tpu.pipeline_mode<synchronous>, transform_indices = @transform_1, window_bounds = array<i64: 256, 128>}, {transform_indices = @transform_2, window_bounds = array<i64: 1, 256>}, {transform_indices = @transform_3, window_bounds = array<i64: 16, 256>}]} {
    %c256_i32 = arith.constant 256 : i32
    %0 = arith.muli %arg1, %c256_i32 : i32
    %1 = tpu.assume_multiple %0, 256 : i32
    %2 = arith.index_cast %1 : i32 to index
    %c0 = arith.constant 0 : index
    %3 = vector.load %arg3[%2, %c0] : memref<256x128xbf16, #tpu.memory_space<vmem>>, vector<256x128xbf16>
    %c0_0 = arith.constant 0 : index
    %c0_1 = arith.constant 0 : index
    %4 = vector.load %arg2[%c0_0, %c0_1] : memref<16x128xbf16, #tpu.memory_space<vmem>>, vector<16x128xbf16>
    %cst = arith.constant dense<0.000000e+00> : vector<16x256xf32>
    %5 = tpu.matmul %4, %3, %cst {dimension_numbers = #tpu.dot_dimension_numbers<[1], [1], [0], [0], [0, 0, 1, 0], [], []>} : vector<16x128xbf16>, vector<256x128xbf16>, vector<16x256xf32> -> vector<16x256xf32>
    %c0_2 = arith.constant 0 : index
    %c0_3 = arith.constant 0 : index
    %6 = vector.load %arg4[%c0_2, %c0_3] : memref<1x256xf32, #tpu.memory_space<vmem>>, vector<1x256xf32>
    %7 = vector.broadcast %6 : vector<1x256xf32> to vector<16x256xf32>
    %8 = arith.addf %5, %7 : vector<16x256xf32>
    %9 = arith.truncf %8 : vector<16x256xf32> to vector<16x256xbf16>
    %c0_4 = arith.constant 0 : index
    %c0_5 = arith.constant 0 : index
    %10 = vector.load %arg5[%c0_4, %c0_5] : memref<16x256xbf16, #tpu.memory_space<vmem>>, vector<16x256xbf16>
    tpu.vector_store %arg5[%c0_4, %c0_5], %9 {strides = array<i32>} : memref<16x256xbf16, #tpu.memory_space<vmem>>, vector<16x256xbf16>,
    return
  }
  func.func @transform_0(%arg0: i32, %arg1: i32) -> (i32, i32) {
    %c0_i32 = arith.constant 0 : i32
    %c0_i32_0 = arith.constant 0 : i32
    return %arg0, %c0_i32 : i32, i32
  }
  func.func @transform_1(%arg0: i32, %arg1: i32) -> (i32, i32) {
    %c0_i32 = arith.constant 0 : i32
    %c0_i32_0 = arith.constant 0 : i32
    %c0_i32_1 = arith.constant 0 : i32
    return %c0_i32, %c0_i32_0 : i32, i32
  }
  func.func @transform_2(%arg0: i32, %arg1: i32) -> (i32, i32) {
    %c0_i32 = arith.constant 0 : i32
    %c0_i32_0 = arith.constant 0 : i32
    return %c0_i32, %arg1 : i32, i32
  }
  func.func @transform_3(%arg0: i32, %arg1: i32) -> (i32, i32) {
    %c0_i32 = arith.constant 0 : i32
    return %arg0, %arg1 : i32, i32
  }
}

</mosaic_0001>

<bundles_post_ra>
// kernel: _lambda_.1
= control target key start
LH: loop header
LB: loop body
LE: loop exit
PB: predicated region body
PF: predicated region fallthrough
CT: control target
= control target key end

     0   :  { %8 = vsyncpa [#allocation3], 0  ;;  %s403_s0 = inlined_call_operand.vmem [shape: bf16[16,128], index: 0, kind: input, shape index: {}]   ;;  %s404_s1 = inlined_call_operand.hbm [shape: bf16[256,128], index: 1, kind: input, shape index: {}]   ;;  %s405_s2 = inlined_call_operand.vmem [shape: f32[1,256], index: 2, kind: input, shape index: {}]   ;;  %s406_s3 = inlined_call_operand.hbm [shape: bf16[16,256], index: 3, kind: output, shape index: {}]  }
   0x1   :  { %9 = vsyncpa [#allocation4], 0  ;;  %s365_s12 = smov [#allocation2]  }
   0x2   :  { %s17_s13 = sshll.u32 %s365_s12, 4  ;;  %s18_s13 = int_to_ptr.vmem [resolvable:$true] %s17_s13 }
   0x3   :  { %s329_s14 = scalar_lea.vmem %s18_s13, 2048  ;;  %p334_p1 = scmp.lt.s32.totalorder %s18_s13, %s18_s13 }
   0x4   :  { %p330_p0 = scmp.ne.s32.totalorder %s18_s13, %s329_s14  ;;  %p335_p2 = scmp.lt.s32.totalorder %s329_s14, %s329_s14 }
   0x6   :  { %p336_p3 = por %p335_p2, %p334_p1 }
   0x8   :  { %p337_p4 = pnand %p336_p3, %p330_p0 }
   0xa   :  { %340 = shalt.err (!%p337_p4)
}
   0xb   :  { %s366_s15 = smov 64   ;;  %s367_s16 = smov 4  }
   0xc   :  { %23 = dma.hbm_to_vmem [thread:$0]  %s404_s1, 2048, %s18_s13, [#allocation3], %s366_s15, %s366_s15, %s367_s16  }
   0xd   :  { %361 = dma.done.wait [#allocation3], 2048  }
   0xe   :  { %362 = vsyncadd [#allocation3], 4294965248  ;;  %v304_v0 = vld [vmem:[#allocation2 + $0x78] sm:$0xff]   ;;  %v306_v2 = vld [vmem:[#allocation2 + $0x70] sm:$0xff]   ;;  %v71_v17 = vlaneseq  ;;  %s368_s21 = smov [#allocation5]  }
   0xf   :  { %v305_v1 = vld [vmem:[#allocation2 + $0x38] sm:$0xff]   ;;  %280 = vmatprep.subr.bf16.mxu0 %v304_v0  ;;  %v307_v3 = vld [vmem:[#allocation2 + $0x30] sm:$0xff]   ;;  %v308_v4 = vld [vmem:[#allocation2 + $0x68] sm:$0xff]   ;;  %s245_s22 = sshll.u32 %s368_s21, 4  ;;  %s246_s22 = int_to_ptr.vmem [resolvable:$true] %s245_s22 }
  0x10   :  { %281 = vmatpush3.bf16.xpose.msra.mxu0 %v305_v1  ;;  %v309_v5 = vld [vmem:[#allocation2 + $0x28] sm:$0xff]   ;;  %v310_v6 = vld [vmem:[#allocation2 + $0x60] sm:$0xff]   ;;  %v312_v9 = vld [vmem:[#allocation2 + $0x58] sm:$0xff]   ;;  %v72_v18 = vshrl.u32 %v71_v17, 7  ;;  %s341_s23 = scalar_lea.vmem %s246_s22, 256  ;;  %p346_p6 = scmp.lt.s32.totalorder %s246_s22, %s246_s22 }
  0x11   :  { %282 = vmatprep.subr.bf16.mxu0 %v306_v2  ;;  %v320_v7 = vld [vmem:[%s403_s0] sm:$0xff]   ;;  %v313_v10 = vld [vmem:[#allocation2 + $0x18] sm:$0xff]   ;;  %v314_v11 = vld [vmem:[#allocation2 + $0x50] sm:$0xff]   ;;  %p342_p5 = scmp.ne.s32.totalorder %s246_s22, %s341_s23  ;;  %p347_p7 = scmp.lt.s32.totalorder %s341_s23, %s341_s23 }
  0x12   :  { %296 = vmatprep.mubr.bf16.mxu0 %v320_v7  ;;  %v311_v8 = vld [vmem:[#allocation2 + $0x20] sm:$0xff]   ;;  %v315_v12 = vld [vmem:[#allocation2 + $0x10] sm:$0xff]   ;;  %v316_v13 = vld [vmem:[#allocation2 + $0x48] sm:$0xff]   ;;  %v73_v19 = vsub.s32 0, %v72_v18  ;;  %v77_v20 = vsub.s32 1, %v72_v18 }
  0x13   :  { %v317_v14 = vld [vmem:[#allocation2 + $0x8] sm:$0xff]   ;;  %v318_v15 = vld [vmem:[#allocation2 + $0x40] sm:$0xff]   ;;  %p348_p8 = por %p347_p7, %p346_p6 }
  0x14   :  { %v319_v16 = vld [vmem:[#allocation2] sm:$0xff]  }
  0x15   :  { %v69_v21 = vld [vmem:[%s405_s2] sm:$0x3]  ;;  %p349_p9 = pnand %p348_p8, %p342_p5 }
  0x16   :  { %v74_v22 = vrot.slane %v69_v21, %v73_v19  ;;  %v78_v23 = vrot.slane %v69_v21, %v77_v20 }
  0x18   :  { %283 = vmatpush3.bf16.xpose.msra.mxu0 %v307_v3 }
  0x19   :  { %284 = vmatprep.subr.bf16.mxu0 %v308_v4 }
  0x20   :  { %285 = vmatpush3.bf16.xpose.msra.mxu0 %v309_v5 }
  0x21   :  { %286 = vmatprep.subr.bf16.mxu0 %v310_v6 }
  0x28   :  { %287 = vmatpush3.bf16.xpose.msra.mxu0 %v311_v8 }
  0x29   :  { %288 = vmatprep.subr.bf16.mxu0 %v312_v9 }
  0x30   :  { %289 = vmatpush3.bf16.xpose.msra.mxu0 %v313_v10 }
  0x31   :  { %290 = vmatprep.subr.bf16.mxu0 %v314_v11 }
  0x38   :  { %291 = vmatpush3.bf16.xpose.msra.mxu0 %v315_v12 }
  0x39   :  { %292 = vmatprep.subr.bf16.mxu0 %v316_v13 }
  0x40   :  { %293 = vmatpush3.bf16.xpose.msra.mxu0 %v317_v14 }
  0x41   :  { %294 = vmatprep.subr.bf16.mxu0 %v318_v15 }
  0x48   :  { %295 = vmatpush3.bf16.xpose.msra.mxu0 %v319_v16 }
  0x4f   :  { %297 = vmatmul.mubr.bf16.vlgmr.msra.gmra.mxu0 %v320_v7 }
 0x10f   :  { %v217_v24 = vpop.f32.mrf.mxu0 }
 0x110   :  { %v218_v26 = vadd.f32 %v217_v24, %v74_v22 }
 0x111   :  { %v219_v25 = vpop.f32.mrf.mxu0 }
 0x112   :  { %v220_v27 = vadd.f32 %v219_v25, %v78_v23 }
 0x113   :  { %v221_v28 = vpop.f32.mrf.mxu0 }
 0x114   :  { %v278_v29 = vpack.c.bf16 %v220_v27, %v218_v26  ;;  %v222_v31 = vadd.f32 %v221_v28, %v74_v22 }
 0x115   :  { %v223_v30 = vpop.f32.mrf.mxu0 }
 0x116   :  { %238 = vst [vmem:[#allocation5] sm:$0xff] %v278_v29  ;;  %v224_v32 = vadd.f32 %v223_v30, %v78_v23 }
 0x118   :  { %v279_v33 = vpack.c.bf16 %v224_v32, %v222_v31 }
 0x11a   :  { %239 = vst [vmem:[#allocation5 + $0x8] sm:$0xff] %v279_v33 }
 0x11b   :  { %352 = shalt.err (!%p349_p9)
}
 0x11c   :  { %s369_s2 = smov 128   ;;  %s370_s24 = smov 8  }
 0x11d   :  { %251 = dma.vmem_to_hbm [thread:$0]  %s246_s22, 256, %s406_s3, [#allocation4], %s369_s2, %s369_s2, %s370_s24  }
 0x11e   :  { %363 = dma.done.wait [#allocation4], 256  }
 0x11f   :  { %364 = vsyncadd [#allocation4], 4294967040 }
 0x120   :  { %255 = vsyncpa [#allocation3], 1 }
 0x121   :  { %256 = vsyncpa [#allocation4], 1 }

</bundles_post_ra>
